<compile_context>
chip_gen: v7x
topology: tpu7x:2x2x1
jax: 0.10.0
libtpu: 0.0.40
codegen_flags: <defaults>
</compile_context>

<pallas_src>
import jax
import jax.numpy as jnp
from jax.experimental import pallas as pl
from jax.experimental.pallas import tpu as pltpu


def perturbator_kernel(state_ref, act_ref,
                       w1s_ref, w1a_ref, b1_ref,
                       w2_ref, b2_ref,
                       w3_ref, b3_ref,
                       out_ref):
    # state_ref: (TB, input_dim), act_ref: (TB, action_dim)
    s = state_ref[...]
    a = act_ref[...]

    # linear1 on the virtual concat: cat([s, a]) @ w1 == s @ w1[:Din] + a @ w1[Din:]
    h1 = jnp.dot(s, w1s_ref[...], preferred_element_type=jnp.float32)
    h1 = h1 + jnp.dot(a, w1a_ref[...], preferred_element_type=jnp.float32)
    h1 = jnp.maximum(h1 + b1_ref[...], 0.0)      # (1, H) bias broadcasts over rows
    # dropout (eval mode): identity

    # linear2 + relu
    h2 = jnp.dot(h1, w2_ref[...], preferred_element_type=jnp.float32)
    h2 = jnp.maximum(h2 + b2_ref[...], 0.0)
    # dropout (eval mode): identity

    # linear3 + residual action (reuses the already-loaded action tile)
    o = jnp.dot(h2, w3_ref[...], preferred_element_type=jnp.float32)
    out_ref[...] = (o + b3_ref[...] + a).astype(out_ref.dtype)


def _pick_tile_b(B, *, budget_bytes=32 << 20, min_grid_steps=2, max_tile=16384):
    """Pick the largest batch tile (multiple of 8) whose *lane-padded* VMEM
    footprint fits `budget_bytes`, while keeping at least `min_grid_steps`
    grid steps when B allows it (so v7x's two TensorCores both get work).

    Lane-padded accounting: each narrow-feature f32 block (state/action/out,
    features <= 128) occupies 128 lanes * 4 B = 512 B per row in VMEM, and the
    state/action/out blocks are double-buffered by the pipeline; the h1/h2
    f32 intermediates add two more 128-lane rows. ~4 KiB per batch row total.
    """
    if B <= 8:
        return B
    per_row = 4 * 128 * (2 * 3 + 2)          # = 4096 bytes / row, lane-padded
    cap = max(8, budget_bytes // per_row)     # ~8192 rows at the default budget
    # Keep >=2 grid steps so the "parallel" batch axis shards across both TCs on v7x.
    half = -(-B // min_grid_steps)            # ceil(B / min_grid_steps)
    half = max(8, ((half + 7) // 8) * 8)
    tile = min(B, max_tile, cap, half)
    return max(8, (tile // 8) * 8)


def perturbator_forward(state, action, params, *, tile_b=None,
                        vmem_limit_bytes=48 << 20, training=False):
    """state: (B, input_dim), action: (B, action_dim), params: dict of weights.

    Weights are stored pre-transposed as [in_features, out_features]."""
    if training:
        # TODO(synk): training-mode dropout not implemented in the kernel.
        raise NotImplementedError("Perturbator Pallas kernel is eval-mode only "
                                  "(dropout = identity).")

    B, input_dim = state.shape
    action_dim = action.shape[1]
    hidden = params["w2"].shape[0]

    # Split w1 once (trace-time slice of a tiny weight) so no runtime concat
    # of activations is needed.
    w1s = params["w1"][:input_dim]     # (input_dim, hidden)
    w1a = params["w1"][input_dim:]     # (action_dim, hidden)

    if tile_b is None:
        tile_b = _pick_tile_b(B)
    grid = (pl.cdiv(B, tile_b),)

    def batch_spec(feat):
        return pl.BlockSpec((tile_b, feat), lambda i: (i, 0))

    def resident(arr):
        # Same block for every grid step -> stays VMEM-resident.
        return pl.BlockSpec(arr.shape, lambda i: (0, 0))

    args = (state, action,
            w1s, w1a, params["b1"],
            params["w2"], params["b2"],
            params["w3"], params["b3"])

    in_specs = [
        batch_spec(input_dim),     # state
        batch_spec(action_dim),    # action
        resident(w1s), resident(w1a), resident(params["b1"]),
        resident(params["w2"]), resident(params["b2"]),
        resident(params["w3"]), resident(params["b3"]),
    ]

    # Advisory cost estimate: tiny memory-bound op.
    d_in = input_dim + action_dim
    flops = 2 * B * (d_in * hidden + hidden * hidden + hidden * action_dim)
    weight_elems = (d_in * hidden + hidden + hidden * hidden + hidden
                    + hidden * action_dim + action_dim)
    bytes_accessed = 4 * (B * (input_dim + 2 * action_dim) + weight_elems)
    cost = pl.CostEstimate(flops=flops, transcendentals=0,
                           bytes_accessed=bytes_accessed)

    return pl.pallas_call(
        perturbator_kernel,
        out_shape=jax.ShapeDtypeStruct((B, action_dim), jnp.float32),
        grid=grid,
        in_specs=in_specs,
        out_specs=pl.BlockSpec((tile_b, action_dim), lambda i: (i, 0)),
        compiler_params=pltpu.CompilerParams(
            dimension_semantics=("parallel",),
            vmem_limit_bytes=vmem_limit_bytes,
        ),
        cost_estimate=cost,
    )(*args)


def init_params(key, input_dim, action_dim, hidden_size, init_w=0.3):
    """Deterministic init mirroring PyTorch nn.Linear defaults + linear3
    uniform(-init_w, init_w). Weights stored transposed: [in, out]."""
    k1, k2, k3, k4, k5, k6 = jax.random.split(key, 6)
    d_in = input_dim + action_dim

    def lin_init(kw, kb, fan_in, fan_out):
        bound = 1.0 / jnp.sqrt(fan_in)
        w = jax.random.uniform(kw, (fan_in, fan_out), jnp.float32, -bound, bound)
        b = jax.random.uniform(kb, (1, fan_out), jnp.float32, -bound, bound)
        return w, b

    w1, b1 = lin_init(k1, k2, d_in, hidden_size)
    w2, b2 = lin_init(k3, k4, hidden_size, hidden_size)
    w3 = jax.random.uniform(k5, (hidden_size, action_dim), jnp.float32, -init_w, init_w)
    b3 = jax.random.uniform(k6, (1, action_dim), jnp.float32, -init_w, init_w)
    return dict(w1=w1, b1=b1, w2=w2, b2=b2, w3=w3, b3=b3)


def reference_forward(state, action, p):
    """Pure-JAX reference (eval-mode dropout)."""
    a = jnp.concatenate([state, action], axis=1)
    a = jnp.maximum(a @ p["w1"] + p["b1"], 0.0)
    a = jnp.maximum(a @ p["w2"] + p["b2"], 0.0)
    a = a @ p["w3"] + p["b3"]
    return a + action


if __name__ == "__main__":
    batch = 64
    input_dim = 16
    action_dim = 8
    hidden_size = 32

    key = jax.random.PRNGKey(0)
    kp, ks, ka = jax.random.split(key, 3)

    params = init_params(kp, input_dim, action_dim, hidden_size)
    state = jax.random.normal(ks, (batch, input_dim), jnp.float32)
    action = jax.random.normal(ka, (batch, action_dim), jnp.float32)

    ref = reference_forward(state, action, params)

    # Default tile (>=2 grid steps so the batch axis shards across TCs on v7x).
    out = perturbator_forward(state, action, params)
    out = jax.block_until_ready(out)
    assert out.shape == (batch, action_dim)
    assert jnp.allclose(out, ref, atol=1e-5, rtol=1e-5), "mismatch vs reference (default tile)"

    # Explicit small tile to exercise the multi-step batch grid / resident weights,
    # including a non-power-of-two step count.
    out_tiled = perturbator_forward(state, action, params, tile_b=16)
    out_tiled = jax.block_until_ready(out_tiled)
    assert jnp.allclose(out_tiled, ref, atol=1e-5, rtol=1e-5), "mismatch vs reference (tiled)"

    # Whole-batch single-step tile still works (e.g. when B is small).
    out_single = perturbator_forward(state, action, params, tile_b=batch)
    out_single = jax.block_until_ready(out_single)
    assert jnp.allclose(out_single, ref, atol=1e-5, rtol=1e-5), "mismatch vs reference (single)"

    print("KERNEL_OK")
</pallas_src>

<mosaic_0001>
module attributes {stable_mosaic.version = 11 : i64} {
  func.func @perturbator_kernel(%arg0: i32, %arg1: memref<32x16xf32, #tpu.memory_space<vmem>>, %arg2: memref<32x8xf32, #tpu.memory_space<vmem>>, %arg3: memref<16x32xf32, #tpu.memory_space<vmem>>, %arg4: memref<8x32xf32, #tpu.memory_space<vmem>>, %arg5: memref<1x32xf32, #tpu.memory_space<vmem>>, %arg6: memref<32x32xf32, #tpu.memory_space<vmem>>, %arg7: memref<1x32xf32, #tpu.memory_space<vmem>>, %arg8: memref<32x8xf32, #tpu.memory_space<vmem>>, %arg9: memref<1x8xf32, #tpu.memory_space<vmem>>, %arg10: memref<32x8xf32, #tpu.memory_space<vmem>>) attributes {dimension_semantics = [#tpu.dimension_semantics<parallel>], iteration_bounds = array<i64: 2>, scalar_prefetch = 0 : i64, scratch_operands = 0 : i64, tpu.core_type = #tpu.core_type<tc>, window_params = [{transform_indices = @transform_0, window_bounds = array<i64: 32, 16>}, {transform_indices = @transform_1, window_bounds = array<i64: 32, 8>}, {pipeline_mode = #tpu.pipeline_mode<synchronous>, transform_indices = @transform_2, window_bounds = array<i64: 16, 32>}, {pipeline_mode = #tpu.pipeline_mode<synchronous>, transform_indices = @transform_3, window_bounds = array<i64: 8, 32>}, {pipeline_mode = #tpu.pipeline_mode<synchronous>, transform_indices = @transform_4, window_bounds = array<i64: 1, 32>}, {pipeline_mode = #tpu.pipeline_mode<synchronous>, transform_indices = @transform_5, window_bounds = array<i64: 32, 32>}, {pipeline_mode = #tpu.pipeline_mode<synchronous>, transform_indices = @transform_6, window_bounds = array<i64: 1, 32>}, {pipeline_mode = #tpu.pipeline_mode<synchronous>, transform_indices = @transform_7, window_bounds = array<i64: 32, 8>}, {pipeline_mode = #tpu.pipeline_mode<synchronous>, transform_indices = @transform_8, window_bounds = array<i64: 1, 8>}, {transform_indices = @transform_9, window_bounds = array<i64: 32, 8>}]} {
    %c0 = arith.constant 0 : index
    %c0_0 = arith.constant 0 : index
    %0 = vector.load %arg1[%c0, %c0_0] : memref<32x16xf32, #tpu.memory_space<vmem>>, vector<32x16xf32>
    %c0_1 = arith.constant 0 : index
    %c0_2 = arith.constant 0 : index
    %1 = vector.load %arg2[%c0_1, %c0_2] : memref<32x8xf32, #tpu.memory_space<vmem>>, vector<32x8xf32>
    %c0_3 = arith.constant 0 : index
    %c0_4 = arith.constant 0 : index
    %2 = vector.load %arg3[%c0_3, %c0_4] : memref<16x32xf32, #tpu.memory_space<vmem>>, vector<16x32xf32>
    %cst = arith.constant dense<0.000000e+00> : vector<32x32xf32>
    %3 = tpu.matmul %0, %2, %cst {dimension_numbers = #tpu.dot_dimension_numbers<[1], [0], [0], [1], [0, 0, 1, 1], [], []>} : vector<32x16xf32>, vector<16x32xf32>, vector<32x32xf32> -> vector<32x32xf32>
    %c0_5 = arith.constant 0 : index
    %c0_6 = arith.constant 0 : index
    %4 = vector.load %arg4[%c0_5, %c0_6] : memref<8x32xf32, #tpu.memory_space<vmem>>, vector<8x32xf32>
    %cst_7 = arith.constant dense<0.000000e+00> : vector<32x32xf32>
    %5 = tpu.matmul %1, %4, %cst_7 {dimension_numbers = #tpu.dot_dimension_numbers<[1], [0], [0], [1], [0, 0, 1, 1], [], []>} : vector<32x8xf32>, vector<8x32xf32>, vector<32x32xf32> -> vector<32x32xf32>
    %6 = arith.addf %3, %5 : vector<32x32xf32>
    %c0_8 = arith.constant 0 : index
    %c0_9 = arith.constant 0 : index
    %7 = vector.load %arg5[%c0_8, %c0_9] : memref<1x32xf32, #tpu.memory_space<vmem>>, vector<1x32xf32>
    %8 = vector.broadcast %7 : vector<1x32xf32> to vector<32x32xf32>
    %9 = arith.addf %6, %8 : vector<32x32xf32>
    %cst_10 = arith.constant 0.000000e+00 : f32
    %10 = vector.broadcast %cst_10 : f32 to vector<32x32xf32>
    %11 = arith.maximumf %9, %10 : vector<32x32xf32>
    %c0_11 = arith.constant 0 : index
    %c0_12 = arith.constant 0 : index
    %12 = vector.load %arg6[%c0_11, %c0_12] : memref<32x32xf32, #tpu.memory_space<vmem>>, vector<32x32xf32>
    %cst_13 = arith.constant dense<0.000000e+00> : vector<32x32xf32>
    %13 = tpu.matmul %11, %12, %cst_13 {dimension_numbers = #tpu.dot_dimension_numbers<[1], [0], [0], [1], [0, 0, 1, 1], [], []>} : vector<32x32xf32>, vector<32x32xf32>, vector<32x32xf32> -> vector<32x32xf32>
    %c0_14 = arith.constant 0 : index
    %c0_15 = arith.constant 0 : index
    %14 = vector.load %arg7[%c0_14, %c0_15] : memref<1x32xf32, #tpu.memory_space<vmem>>, vector<1x32xf32>
    %15 = vector.broadcast %14 : vector<1x32xf32> to vector<32x32xf32>
    %16 = arith.addf %13, %15 : vector<32x32xf32>
    %cst_16 = arith.constant 0.000000e+00 : f32
    %17 = vector.broadcast %cst_16 : f32 to vector<32x32xf32>
    %18 = arith.maximumf %16, %17 : vector<32x32xf32>
    %c0_17 = arith.constant 0 : index
    %c0_18 = arith.constant 0 : index
    %19 = vector.load %arg8[%c0_17, %c0_18] : memref<32x8xf32, #tpu.memory_space<vmem>>, vector<32x8xf32>
    %cst_19 = arith.constant dense<0.000000e+00> : vector<32x8xf32>
    %20 = tpu.matmul %18, %19, %cst_19 {dimension_numbers = #tpu.dot_dimension_numbers<[1], [0], [0], [1], [0, 0, 1, 1], [], []>} : vector<32x32xf32>, vector<32x8xf32>, vector<32x8xf32> -> vector<32x8xf32>
    %c0_20 = arith.constant 0 : index
    %c0_21 = arith.constant 0 : index
    %21 = vector.load %arg9[%c0_20, %c0_21] : memref<1x8xf32, #tpu.memory_space<vmem>>, vector<1x8xf32>
    %22 = vector.broadcast %21 : vector<1x8xf32> to vector<32x8xf32>
    %23 = arith.addf %20, %22 : vector<32x8xf32>
    %24 = arith.addf %23, %1 : vector<32x8xf32>
    %c0_22 = arith.constant 0 : index
    %c0_23 = arith.constant 0 : index
    %25 = vector.load %arg10[%c0_22, %c0_23] : memref<32x8xf32, #tpu.memory_space<vmem>>, vector<32x8xf32>
    tpu.vector_store %arg10[%c0_22, %c0_23], %24 {strides = array<i32>} : memref<32x8xf32, #tpu.memory_space<vmem>>, vector<32x8xf32>,
    return
  }
  func.func @transform_0(%arg0: i32) -> (i32, i32) {
    %c0_i32 = arith.constant 0 : i32
    %c0_i32_0 = arith.constant 0 : i32
    return %arg0, %c0_i32 : i32, i32
  }
  func.func @transform_1(%arg0: i32) -> (i32, i32) {
    %c0_i32 = arith.constant 0 : i32
    %c0_i32_0 = arith.constant 0 : i32
    return %arg0, %c0_i32 : i32, i32
  }
  func.func @transform_2(%arg0: i32) -> (i32, i32) {
    %c0_i32 = arith.constant 0 : i32
    %c0_i32_0 = arith.constant 0 : i32
    %c0_i32_1 = arith.constant 0 : i32
    return %c0_i32, %c0_i32_0 : i32, i32
  }
  func.func @transform_3(%arg0: i32) -> (i32, i32) {
    %c0_i32 = arith.constant 0 : i32
    %c0_i32_0 = arith.constant 0 : i32
    %c0_i32_1 = arith.constant 0 : i32
    return %c0_i32, %c0_i32_0 : i32, i32
  }
  func.func @transform_4(%arg0: i32) -> (i32, i32) {
    %c0_i32 = arith.constant 0 : i32
    %c0_i32_0 = arith.constant 0 : i32
    %c0_i32_1 = arith.constant 0 : i32
    return %c0_i32, %c0_i32_0 : i32, i32
  }
  func.func @transform_5(%arg0: i32) -> (i32, i32) {
    %c0_i32 = arith.constant 0 : i32
    %c0_i32_0 = arith.constant 0 : i32
    %c0_i32_1 = arith.constant 0 : i32
    return %c0_i32, %c0_i32_0 : i32, i32
  }
  func.func @transform_6(%arg0: i32) -> (i32, i32) {
    %c0_i32 = arith.constant 0 : i32
    %c0_i32_0 = arith.constant 0 : i32
    %c0_i32_1 = arith.constant 0 : i32
    return %c0_i32, %c0_i32_0 : i32, i32
  }
  func.func @transform_7(%arg0: i32) -> (i32, i32) {
    %c0_i32 = arith.constant 0 : i32
    %c0_i32_0 = arith.constant 0 : i32
    %c0_i32_1 = arith.constant 0 : i32
    return %c0_i32, %c0_i32_0 : i32, i32
  }
  func.func @transform_8(%arg0: i32) -> (i32, i32) {
    %c0_i32 = arith.constant 0 : i32
    %c0_i32_0 = arith.constant 0 : i32
    %c0_i32_1 = arith.constant 0 : i32
    return %c0_i32, %c0_i32_0 : i32, i32
  }
  func.func @transform_9(%arg0: i32) -> (i32, i32) {
    %c0_i32 = arith.constant 0 : i32
    %c0_i32_0 = arith.constant 0 : i32
    return %arg0, %c0_i32 : i32, i32
  }
}

</mosaic_0001>

<bundles_post_ra>
// kernel: tpu_custom_call.1
= control target key start
LH: loop header
LB: loop body
LE: loop exit
PB: predicated region body
PF: predicated region fallthrough
CT: control target
= control target key end

     0   :  { %s1076_s30 = smov 0   ;;  %s1175_s0 = inlined_call_operand.vmem [shape: f32[64,16], index: 0, kind: input, shape index: {}]   ;;  %s1176_s1 = inlined_call_operand.vmem [shape: f32[64,8], index: 1, kind: input, shape index: {}]   ;;  %s1177_s2 = inlined_call_operand.vmem [shape: f32[16,32], index: 2, kind: input, shape index: {}]   ;;  %s1178_s3 = inlined_call_operand.vmem [shape: f32[8,32], index: 3, kind: input, shape index: {}]   ;;  %s1179_s4 = inlined_call_operand.vmem [shape: f32[1,32], index: 4, kind: input, shape index: {}]   ;;  %s1180_s5 = inlined_call_operand.vmem [shape: f32[32,32], index: 5, kind: input, shape index: {}]   ;;  %s1181_s6 = inlined_call_operand.vmem [shape: f32[1,32], index: 6, kind: input, shape index: {}]   ;;  %s1182_s7 = inlined_call_operand.vmem [shape: f32[32,8], index: 7, kind: input, shape index: {}]   ;;  %s1183_s8 = inlined_call_operand.vmem [shape: f32[1,8], index: 8, kind: input, shape index: {}]   ;;  %s1184_s9 = inlined_call_operand.vmem [shape: f32[64,8], index: 9, kind: output, shape index: {}]  }
   0x1 LB: > { %s877_s10 = sadd.s32 4294967295, %s1024_s30   ;;  %p881_p0 = scmp.ge.s32.totalorder %s1024_s30, 1  ;;  %s1024_s30 = sphi %s1076_s30, %s19_s30  }
   0x2   : > { %p299_p1 = scmp.lt.s32.totalorder %s1024_s30, 3 }
   0x4   : > { %p300_p2 = pnand %p881_p0, %p299_p1 }
   0x5   : > { %v368_v0 = vld [vmem:[%s1178_s3] sm:$0xff] (!%p300_p2)  ;;  %s882_s13 = sshll.u32 (!%p300_p2), %s877_s10, 2  ;;  %v367_v2 = vld [vmem:[%s1177_s2 + $0x8] sm:$0xff] (!%p300_p2)  ;;  %vm369_vm0 = vcmask (!%p300_p2), 64512   ;;  %vm467_vm1 = vcmask (!%p300_p2), 130048   ;;  %v582_v15 = vld [vmem:[%s1180_s5 + $0x10] sm:$0xff] (!%p300_p2) }
   0x6   : > { %303 = sbr.rel (%p300_p2) target bundleno = 684 (0x2ac), region = 56  ;;  %v366_v1 = vld [vmem:[%s1177_s2] sm:$0xff] (!%p300_p2)  ;;  %936 = vmatprep.subr.mxu0 (!%p300_p2), %v368_v0  ;;  %p341_p3 = scmp.lt.s32.totalorder (!%p300_p2), %s882_s13, 7  ;;  %v581_v5 = vld [vmem:[%s1180_s5 + $0x8] sm:$0xff] (!%p300_p2)  ;;  %v583_v16 = vld [vmem:[%s1180_s5 + $0x18] sm:$0xff] (!%p300_p2)  ;;  %vm591_vm2 = vcmask (!%p300_p2), 261120  }
   0x7   : > { %v982_v3 = vpack.c.bf16 (!%p300_p2), %v367_v2, %v366_v1  ;;  %v580_v4 = vld [vmem:[%s1180_s5] sm:$0xff] (!%p300_p2)  ;;  %937 = vmatpush3.msra.mxu0 (!%p300_p2), %v368_v0  ;;  %v990_v17 = vpack.c.bf16 (!%p300_p2), %v583_v16, %v582_v15  ;;  %v694_v19 = vld [vmem:[%s1182_s7 + $0x8] sm:$0xff] (!%p300_p2)  ;;  %v695_v34 = vld [vmem:[%s1182_s7 + $0x10] sm:$0xff] (!%p300_p2) }
   0x8   : > { %v986_v6 = vpack.c.bf16 (!%p300_p2), %v581_v5, %v580_v4  ;;  %v693_v18 = vld [vmem:[%s1182_s7] sm:$0xff] (!%p300_p2)  ;;  %v696_v35 = vld [vmem:[%s1182_s7 + $0x18] sm:$0xff] (!%p300_p2) }
   0x9   : > { %983 = vmatprep.subr.bf16.mxu0 (!%p300_p2), %v982_v3  ;;  %v994_v20 = vpack.c.bf16 (!%p300_p2), %v694_v19, %v693_v18  ;;  %v896_v21 = vld [vmem:[%s1179_s4] ss:$0 sm:$0xff] (!%p300_p2)  ;;  %v998_v36 = vpack.c.bf16 (!%p300_p2), %v696_v35, %v695_v34 }
   0xa   : > { %987 = vmatprep.subr.bf16.mxu1 (!%p300_p2), %v986_v6  ;;  %v897_v37 = vld [vmem:[%s1181_s6] ss:$0 sm:$0xff] (!%p300_p2) }
   0xb   : > { %989 = vmatpush3.bf16.msra.mxu1 (!%p300_p2), %v986_v6  ;;  %v902_v50 = vld [vmem:[%s1183_s8] ss:$0 sm:$0xff] (!%p300_p2) }
   0xc   : > { %991 = vmatprep.subr.bf16.mxu1 (!%p300_p2), %v990_v17 }
   0xd   : > { %s1186_s13 = smov (!%p341_p3, %s882_s13), 7 }
   0xe   : > { %s1099_s22 = sshll.u32 %s1186_s13, 3 }
   0xf   : > { %s350_s25 = scalar_lea.vmem %s1176_s1, %s1099_s22  ;;  %s344_s28 = scalar_lea.vmem %s1175_s0, %s1099_s22  ;;  %993 = vmatpush3.bf16.msra.mxu1 %v990_v17 }
  0x10   : > { %v1105_v7 = vld [vmem:[%s350_s25] sm:$0xff]  ;;  %v1107_v8 = vld [vmem:[%s350_s25 + $0x8] sm:$0xff]  ;;  %v1109_v9 = vld [vmem:[%s350_s25 + $0x10] sm:$0xff]  ;;  %1002 = vmatprep.subr.bf16.mxu1 %v994_v20  ;;  %s356_s10 = scalar_lea.vmem %s1184_s9, %s1099_s22 }
  0x11   : > { %938 = vmatprep.mubr.msk.f32.mxu0 %vm369_vm0, %v1105_v7  ;;  %v1121_v10 = vld [vmem:[%s350_s25 + $0x18] sm:$0xff]  ;;  %v358_v11 = vld [vmem:[%s344_s28] sm:$0xff]  ;;  %v359_v12 = vld [vmem:[%s344_s28 + $0x8] sm:$0xff] }
  0x12   : > { %939 = vmatmul.mubr.msk.f32.vlgmr.msra.gmra.mrb[0].mxu0 %vm369_vm0, %v1107_v8  ;;  %v360_v13 = vld [vmem:[%s344_s28 + $0x10] sm:$0xff]  ;;  %v361_v14 = vld [vmem:[%s344_s28 + $0x18] sm:$0xff] }
  0x13   : > { %985 = vmatpush3.bf16.msra.mxu0 %v982_v3  ;;  %941 = vmatprep.mubr.msk.f32.mxu0 %vm369_vm0, %v1109_v9 }
  0x14   : > { %995 = vmatprep.subr.bf16.mxu0 %v994_v20 }
  0x16   : > { %942 = vmatmul.mubr.msk.f32.gmra.mrb[2].mxu0 %vm369_vm0, %v1121_v10 }
  0x17   : > { %948 = vmatprep.mubr.msk.f32.mxu0 %vm467_vm1, %v358_v11 }
  0x1a   : > { %949 = vmatmul.mubr.msk.f32.vlgmr.msra.gmra.mrb[0].mxu0 %vm467_vm1, %v359_v12 }
  0x1b   : > { %951 = vmatprep.mubr.msk.f32.mxu0 %vm467_vm1, %v360_v13  ;;  %997 = vmatpush3.bf16.msra.mxu0 %v994_v20 }
  0x1c   : > { %999 = vmatprep.subr.bf16.mxu0 %v998_v36 }
  0x1e   : > { %952 = vmatmul.mubr.msk.f32.gmra.mrb[2].mxu0 %vm467_vm1, %v361_v14 }
  0x1f   : > { %1001 = vmatpush3.bf16.msra.mxu0 %v998_v36 }
  0xed   : > { %v950_v22 = vpop.f32.mrb[0].mxu0 }
  0xee   : > { %v573_v23 = vadd.f32 %v950_v22, %v896_v21  ;;  %v546_v24 = vpop.f32.mrb[1].mxu0 }
  0xef   : > { %v572_v25 = vadd.f32 %v896_v21, %v546_v24 }
  0xf0   : > { %v577_v28 = vmax.f32 %v573_v23, 0.0 }
  0xf1   : > { %v576_v26 = vmax.f32 %v572_v25, 0.0  ;;  %v953_v27 = vpop.f32.mrb[2].mxu0 }
  0xf2   : > { %v575_v29 = vadd.f32 %v953_v27, %v896_v21  ;;  %v556_v30 = vpop.f32.mrb[3].mxu0 }
  0xf3   : > { %v574_v31 = vadd.f32 %v896_v21, %v556_v30  ;;  %962 = vmatprep.mubr.msk.f32.mxu1 %vm591_vm2, %v576_v26 }
  0xf4   : > { %963 = vmatmul.mubr.msk.f32.vlgmr.msra.gmra.mrb[0].mxu1 %vm591_vm2, %v577_v28  ;;  %v579_v33 = vmax.f32 %v575_v29, 0.0 }
  0xf5   : > { %v578_v32 = vmax.f32 %v574_v31, 0.0  ;;  %1004 = vmatpush3.bf16.msra.mxu1 %v994_v20 }
  0xf6   : > { %1003 = vmatprep.subr.bf16.mxu1 %v998_v36 }
  0xf7   : > { %965 = vmatprep.mubr.msk.f32.mxu1 %vm591_vm2, %v578_v32 }
  0xf8   : > { %966 = vmatmul.mubr.msk.f32.gmra.mrb[2].mxu1 %vm591_vm2, %v579_v33 }
  0xf9   : > { %1005 = vmatpush3.bf16.msra.mxu1 %v998_v36 }
 0x1c7   : > { %v964_v38 = vpop.f32.mrb[0].mxu1 }
 0x1c8   : > { %v676_v39 = vadd.f32 %v964_v38, %v897_v37  ;;  %v670_v40 = vpop.f32.mrb[1].mxu1 }
 0x1c9   : > { %v671_v41 = vadd.f32 %v897_v37, %v670_v40 }
 0x1ca   : > { %v690_v44 = vmax.f32 %v676_v39, 0.0 }
 0x1cb   : > { %v689_v42 = vmax.f32 %v671_v41, 0.0  ;;  %v967_v43 = vpop.f32.mrb[2].mxu1 }
 0x1cc   : > { %v686_v45 = vadd.f32 %v967_v43, %v897_v37  ;;  %v680_v46 = vpop.f32.mrb[3].mxu1 }
 0x1cd   : > { %v681_v47 = vadd.f32 %v897_v37, %v680_v46  ;;  %976 = vmatprep.mubr.msk.f32.mxu0 %vm591_vm2, %v689_v42 }
 0x1ce   : > { %977 = vmatmul.mubr.msk.f32.vlgmr.msra.gmra.mrb[4].mxu0 %vm591_vm2, %v690_v44  ;;  %v692_v49 = vmax.f32 %v686_v45, 0.0 }
 0x1cf   : > { %v691_v48 = vmax.f32 %v681_v47, 0.0 }
 0x1d1   : > { %979 = vmatprep.mubr.msk.f32.mxu1 %vm591_vm2, %v691_v48 }
 0x1d2   : > { %980 = vmatmul.mubr.msk.f32.vlgmr.msra.gmra.mrb[4].mxu1 %vm591_vm2, %v692_v49 }
 0x2a1   : > { %v978_v51 = vpop.f32.mrb[4].mxu0 }
 0x2a2   : > { %v788_v52 = vadd.f32 %v978_v51, %v902_v50  ;;  %v782_v53 = vpop.f32.mrb[5].mxu0 }
 0x2a3   : > { %v783_v54 = vadd.f32 %v902_v50, %v782_v53 }
 0x2a4   : > { %v802_v57 = vadd.f32 %v788_v52, %v1107_v8 }
 0x2a5   : > { %v801_v55 = vadd.f32 %v783_v54, %v1105_v7  ;;  %v981_v56 = vpop.f32.mrb[4].mxu1 }
 0x2a6   : > { %v798_v58 = vadd.f32 %v981_v56, %v902_v50  ;;  %v792_v59 = vpop.f32.mrb[5].mxu1  ;;  %806 = vst.msk [vmem:[%s356_s10 + $0x8] sm:$0xff] %vm369_vm0, %v802_v57 }
 0x2a7   : > { %805 = vst.msk [vmem:[%s356_s10] sm:$0xff] %vm369_vm0, %v801_v55  ;;  %v793_v60 = vadd.f32 %v902_v50, %v792_v59 }
 0x2a8   : > { %v804_v62 = vadd.f32 %v798_v58, %v1121_v10 }
 0x2a9   : > { %v803_v61 = vadd.f32 %v793_v60, %v1109_v9 }
 0x2aa   : > { %808 = vst.msk [vmem:[%s356_s10 + $0x18] sm:$0xff] %vm369_vm0, %v804_v62 }
 0x2ab   : > { %807 = vst.msk [vmem:[%s356_s10 + $0x10] sm:$0xff] %vm369_vm0, %v803_v61 }
 0x2ac PF: > { %s19_s30 = sadd.s32 1, %s1024_s30  }
 0x2ad   : > { %p16_p4 = scmp.ge.s32.totalorder %s19_s30, 4  }
 0x2af   :  { %18 = sbr.rel (!%p16_p4) target bundleno = 1 (0x1), region = 89 }

</bundles_post_ra>
